<compile_context>
chip_gen: v7x
topology: tpu7x:2x2x1
jax: 0.10.0
libtpu: 0.0.40
codegen_flags: <defaults>
</compile_context>

<pallas_src>
import math
import functools

import jax
import jax.numpy as jnp
from jax.experimental import pallas as pl
from jax.experimental.pallas import tpu as pltpu

DIM_FEEDFORWARD = 128   # fixed by TransEncoder.__init__ (3rd ctor arg)
LN_EPS = 1e-5           # nn.LayerNorm default


# ----------------------------------------------------------------------------
# Kernel: one (batch element, layer) grid step of the encoder stack.
# Dropout layers are identity (eval semantics).
# ----------------------------------------------------------------------------
def _encoder_layer_kernel(x_ref, wqkv_ref, wo_ref, w1_ref, w2_ref, vec_ref,
                          o_ref, x_sc, *, nhead, d_model, dim_ff):
    D = d_model
    hd = D // nhead
    l = pl.program_id(1)

    # Load this batch element's activation into the carried scratch at layer 0.
    @pl.when(l == 0)
    def _():
        x_sc[...] = x_ref[...].astype(jnp.float32)

    x = x_sc[...]                                    # (S, D) f32
    wqkv = wqkv_ref[...].astype(jnp.float32)         # (D, 3D)
    wo = wo_ref[...].astype(jnp.float32)             # (D, D)
    w1 = w1_ref[...].astype(jnp.float32)             # (D, F)
    w2 = w2_ref[...].astype(jnp.float32)             # (F, D)
    vec = vec_ref[...]                               # (8, VW) packed f32 vectors

    b_qkv = vec[0:1, :3 * D]
    bo    = vec[1:2, :D]
    g1    = vec[2:3, :D]
    be1   = vec[3:4, :D]
    b1    = vec[4:5, :dim_ff]
    b2    = vec[5:6, :D]
    g2    = vec[6:7, :D]
    be2   = vec[7:8, :D]

    # ---- fused QKV projection (softmax scale already folded into Q cols) ----
    qkv = jnp.dot(x, wqkv, preferred_element_type=jnp.float32) + b_qkv  # (S, 3D)

    # ---- multi-head self-attention on (S, S) scores, no mask ----------------
    ctxs = []
    for h in range(nhead):                           # static unrolled head loop
        qh = qkv[:, h * hd:(h + 1) * hd]
        kh = qkv[:, D + h * hd:D + (h + 1) * hd]
        vh = qkv[:, 2 * D + h * hd:2 * D + (h + 1) * hd]
        s = jnp.dot(qh, kh.T, preferred_element_type=jnp.float32)       # (S, S)
        s = s - jnp.max(s, axis=-1, keepdims=True)
        p = jnp.exp(s)
        p = p * pl.reciprocal(jnp.sum(p, axis=-1, keepdims=True), approx=False)
        ctxs.append(jnp.dot(p, vh, preferred_element_type=jnp.float32))  # (S, hd)
    ctx = jnp.concatenate(ctxs, axis=-1)             # (S, D) lane-stacked heads
    attn = jnp.dot(ctx, wo, preferred_element_type=jnp.float32) + bo

    # ---- residual + LayerNorm 1 (one-pass statistics) -----------------------
    h1 = x + attn
    mu1 = jnp.mean(h1, axis=-1, keepdims=True)
    ms1 = jnp.mean(h1 * h1, axis=-1, keepdims=True)
    h1 = (h1 - mu1) * jax.lax.rsqrt(ms1 - mu1 * mu1 + LN_EPS) * g1 + be1

    # ---- feed-forward: linear2(relu(linear1(x))) -----------------------------
    f1 = jnp.maximum(jnp.dot(h1, w1, preferred_element_type=jnp.float32) + b1, 0.0)
    f2 = jnp.dot(f1, w2, preferred_element_type=jnp.float32) + b2

    # ---- residual + LayerNorm 2 ----------------------------------------------
    h2 = h1 + f2
    mu2 = jnp.mean(h2, axis=-1, keepdims=True)
    ms2 = jnp.mean(h2 * h2, axis=-1, keepdims=True)
    y = (h2 - mu2) * jax.lax.rsqrt(ms2 - mu2 * mu2 + LN_EPS) * g2 + be2

    x_sc[...] = y                                    # carry to next layer

    @pl.when(l == pl.num_programs(1) - 1)
    def _():
        o_ref[...] = y.astype(o_ref.dtype)


# ----------------------------------------------------------------------------
# Wrapper: one pallas_call, grid over (batch, layer).
# ----------------------------------------------------------------------------
def trans_encoder(inputs_sbd, params, nhead):
    """Matches TransEncoder.forward: inputs (S, B, D) -> (S, B, D)."""
    S, B, D = inputs_sbd.shape
    assert D % nhead == 0, "d_model must be divisible by nhead"
    L = params["wqkv_t"].shape[0]
    F = params["w1_t"].shape[-1]
    VW = params["vec"].shape[-1]

    # (S, B, D) -> (B, S, D): batch-leading layout so the per-batch block's
    # last two dims (S, D) satisfy the (8, 128)/full-dim tiling constraint.
    x_bsd = jnp.transpose(inputs_sbd, (1, 0, 2))

    kernel = functools.partial(_encoder_layer_kernel, nhead=nhead,
                               d_model=D, dim_ff=F)
    out_bsd = pl.pallas_call(
        kernel,
        out_shape=jax.ShapeDtypeStruct((B, S, D), inputs_sbd.dtype),
        grid_spec=pltpu.PrefetchScalarGridSpec(
            num_scalar_prefetch=0,
            grid=(B, L),
            in_specs=[
                pl.BlockSpec((None, S, D), lambda b, l: (b, 0, 0)),       # x
                pl.BlockSpec((None, D, 3 * D), lambda b, l: (l, 0, 0)),   # wqkv
                pl.BlockSpec((None, D, D), lambda b, l: (l, 0, 0)),       # wo
                pl.BlockSpec((None, D, F), lambda b, l: (l, 0, 0)),       # w1
                pl.BlockSpec((None, F, D), lambda b, l: (l, 0, 0)),       # w2
                pl.BlockSpec((None, 8, VW), lambda b, l: (l, 0, 0)),      # vec
            ],
            out_specs=pl.BlockSpec((None, S, D), lambda b, l: (b, 0, 0)),
            scratch_shapes=[pltpu.VMEM((S, D), jnp.float32)],
        ),
        compiler_params=pltpu.CompilerParams(
            dimension_semantics=("parallel", "arbitrary")),
    )(x_bsd, params["wqkv_t"], params["wo_t"],
      params["w1_t"], params["w2_t"], params["vec"])
    return jnp.transpose(out_bsd, (1, 0, 2))


# ----------------------------------------------------------------------------
# Deterministic parameter init (shapes from nn.TransformerEncoderLayer),
# packed for the kernel:
#   * matmul weights pre-transposed (y = x @ W.T), stacked over layers, bf16
#   * 1/sqrt(head_dim) folded into the Q weight/bias (exact reparametrization)
#   * the ten small per-layer vectors packed into one (L, 8, VW) f32 block
# TODO(synk): training-mode dropout (p=0.1) is stochastic and is omitted
# (eval-mode identity is implemented), matching inference semantics.
# ----------------------------------------------------------------------------
def init_params(key, d_model, num_layers, nhead, dim_ff=DIM_FEEDFORWARD):
    D, F = d_model, dim_ff
    hd = D // nhead
    scale = 1.0 / math.sqrt(hd)
    VW = max(128, 3 * D, F)

    def u(k, shape, fan):
        return jax.random.uniform(k, shape, jnp.float32, -1.0, 1.0) / math.sqrt(fan)

    def row(v):
        return jnp.pad(v, (0, VW - v.shape[0]))

    wqkv_l, wo_l, w1_l, w2_l, vec_l = [], [], [], [], []
    for _ in range(num_layers):
        key, *ks = jax.random.split(key, 13)
        in_proj_w = u(ks[0], (3 * D, D), D)     # (3D, D): [Wq; Wk; Wv]
        in_proj_b = u(ks[1], (3 * D,), D)
        out_w = u(ks[2], (D, D), D)             # out_proj.weight
        out_b = u(ks[3], (D,), D)
        w1 = u(ks[4], (F, D), D)                # linear1.weight
        b1 = u(ks[5], (F,), D)
        w2 = u(ks[6], (D, F), F)                # linear2.weight
        b2 = u(ks[7], (D,), F)
        g1 = 1.0 + 0.1 * u(ks[8], (D,), 1.0)    # LN params (randomized to
        be1 = 0.1 * u(ks[9], (D,), 1.0)         #  exercise the full path)
        g2 = 1.0 + 0.1 * u(ks[10], (D,), 1.0)
        be2 = 0.1 * u(ks[11], (D,), 1.0)

        # Fold the softmax scale into the Q projection (mathematically exact).
        in_proj_w = in_proj_w.at[:D].multiply(scale)
        in_proj_b = in_proj_b.at[:D].multiply(scale)

        # y = x @ W.T + b  =>  pre-transpose; store matmul weights in bf16.
        wqkv_l.append(jnp.transpose(in_proj_w).astype(jnp.bfloat16))   # (D, 3D)
        wo_l.append(jnp.transpose(out_w).astype(jnp.bfloat16))         # (D, D)
        w1_l.append(jnp.transpose(w1).astype(jnp.bfloat16))            # (D, F)
        w2_l.append(jnp.transpose(w2).astype(jnp.bfloat16))            # (F, D)
        vec_l.append(jnp.stack([row(in_proj_b), row(out_b), row(g1), row(be1),
                                row(b1), row(b2), row(g2), row(be2)]))  # (8, VW)

    return dict(wqkv_t=jnp.stack(wqkv_l), wo_t=jnp.stack(wo_l),
                w1_t=jnp.stack(w1_l), w2_t=jnp.stack(w2_l),
                vec=jnp.stack(vec_l))


# ----------------------------------------------------------------------------
# Pure-JAX reference (standard per-batch multi-head attention) for correctness.
# Uses the same packed (bf16-stored, scale-folded) parameters upcast to f32.
# ----------------------------------------------------------------------------
def _layer_ref(x_bsd, wqkv_t, wo_t, w1_t, w2_t, vec, nhead, dim_ff):
    B, S, D = x_bsd.shape
    hd = D // nhead
    b_qkv = vec[0, :3 * D]; bo = vec[1, :D]
    g1 = vec[2, :D]; be1 = vec[3, :D]
    b1 = vec[4, :dim_ff]; b2 = vec[5, :D]
    g2 = vec[6, :D]; be2 = vec[7, :D]

    qkv = x_bsd @ wqkv_t + b_qkv               # scale already folded into Wq
    q, k, v = qkv[..., :D], qkv[..., D:2 * D], qkv[..., 2 * D:]
    q = q.reshape(B, S, nhead, hd).transpose(0, 2, 1, 3)
    k = k.reshape(B, S, nhead, hd).transpose(0, 2, 1, 3)
    v = v.reshape(B, S, nhead, hd).transpose(0, 2, 1, 3)
    s = jnp.einsum("bhqd,bhkd->bhqk", q, k)
    p = jax.nn.softmax(s, axis=-1)
    ctx = jnp.einsum("bhqk,bhkd->bhqd", p, v).transpose(0, 2, 1, 3).reshape(B, S, D)
    attn = ctx @ wo_t + bo

    def ln(h, g, b):
        mu = h.mean(-1, keepdims=True)
        var = ((h - mu) ** 2).mean(-1, keepdims=True)
        return (h - mu) * jax.lax.rsqrt(var + LN_EPS) * g + b

    h1 = ln(x_bsd + attn, g1, be1)
    f = jnp.maximum(h1 @ w1_t + b1, 0.0) @ w2_t + b2
    return ln(h1 + f, g2, be2)


def trans_encoder_ref(inputs_sbd, params, nhead):
    x = jnp.transpose(inputs_sbd, (1, 0, 2)).astype(jnp.float32)  # (B, S, D)
    L = params["wqkv_t"].shape[0]
    F = params["w1_t"].shape[-1]
    for l in range(L):
        x = _layer_ref(x,
                       params["wqkv_t"][l].astype(jnp.float32),
                       params["wo_t"][l].astype(jnp.float32),
                       params["w1_t"][l].astype(jnp.float32),
                       params["w2_t"][l].astype(jnp.float32),
                       params["vec"][l], nhead, F)
    return jnp.transpose(x, (1, 0, 2))


if __name__ == "__main__":
    n_xdims, nhead, num_layers = 32, 4, 2     # TransEncoder(n_xdims, nhead, num_layers)
    S, B = 8, 2                               # (seq, batch) — PyTorch seq-first layout

    key = jax.random.PRNGKey(0)
    k_x, k_p = jax.random.split(key)
    inputs = jax.random.normal(k_x, (S, B, n_xdims), jnp.float32)
    params = init_params(k_p, n_xdims, num_layers, nhead)

    out = jax.block_until_ready(trans_encoder(inputs, params, nhead))

    ref = trans_encoder_ref(inputs, params, nhead)
    assert out.shape == (S, B, n_xdims) and out.dtype == jnp.float32
    err = float(jnp.max(jnp.abs(out - ref)))
    if err > 1e-4:
        raise SystemExit(f"mismatch vs reference: max abs err = {err}")
    print("KERNEL_OK")
</pallas_src>

<mosaic_0001>
module attributes {stable_mosaic.version = 11 : i64} {
  func.func @_encoder_layer_kernel(%arg0: i32, %arg1: i32, %arg2: memref<1x8x32xf32, #tpu.memory_space<vmem>>, %arg3: memref<1x32x96xbf16, #tpu.memory_space<vmem>>, %arg4: memref<1x32x32xbf16, #tpu.memory_space<vmem>>, %arg5: memref<1x32x128xbf16, #tpu.memory_space<vmem>>, %arg6: memref<1x128x32xbf16, #tpu.memory_space<vmem>>, %arg7: memref<1x8x128xf32, #tpu.memory_space<vmem>>, %arg8: memref<1x8x32xf32, #tpu.memory_space<vmem>>, %arg9: memref<8x32xf32, #tpu.memory_space<vmem>>) attributes {dimension_semantics = [#tpu.dimension_semantics<parallel>, #tpu.dimension_semantics<arbitrary>], iteration_bounds = array<i64: 2, 2>, scalar_prefetch = 0 : i64, scratch_operands = 1 : i64, tpu.core_type = #tpu.core_type<tc>, window_params = [{transform_indices = @transform_0, window_bounds = array<i64: 1, 8, 32>}, {transform_indices = @transform_1, window_bounds = array<i64: 1, 32, 96>}, {transform_indices = @transform_2, window_bounds = array<i64: 1, 32, 32>}, {transform_indices = @transform_3, window_bounds = array<i64: 1, 32, 128>}, {transform_indices = @transform_4, window_bounds = array<i64: 1, 128, 32>}, {transform_indices = @transform_5, window_bounds = array<i64: 1, 8, 128>}, {transform_indices = @transform_6, window_bounds = array<i64: 1, 8, 32>}]} {
    %c0_i32 = arith.constant 0 : i32
    %0 = arith.cmpi eq, %arg1, %c0_i32 : i32
    %1 = arith.extui %0 : i1 to i32
    %c0_i32_0 = arith.constant 0 : i32
    %2 = arith.cmpi ne, %1, %c0_i32_0 : i32
    scf.if %2 {
      %c0_50 = arith.constant 0 : index
      %c0_51 = arith.constant 0 : index
      %c0_52 = arith.constant 0 : index
      %155 = vector.load %arg2[%c0_50, %c0_51, %c0_52] : memref<1x8x32xf32, #tpu.memory_space<vmem>>, vector<1x8x32xf32>
      %156 = vector.shape_cast %155 : vector<1x8x32xf32> to vector<8x32xf32>
      %c0_53 = arith.constant 0 : index
      %c0_54 = arith.constant 0 : index
      %157 = vector.load %arg9[%c0_53, %c0_54] : memref<8x32xf32, #tpu.memory_space<vmem>>, vector<8x32xf32>
      tpu.vector_store %arg9[%c0_53, %c0_54], %156 {strides = array<i32>} : memref<8x32xf32, #tpu.memory_space<vmem>>, vector<8x32xf32>,
    } else {
    }
    %c0 = arith.constant 0 : index
    %c0_1 = arith.constant 0 : index
    %3 = vector.load %arg9[%c0, %c0_1] : memref<8x32xf32, #tpu.memory_space<vmem>>, vector<8x32xf32>
    %c0_2 = arith.constant 0 : index
    %c0_3 = arith.constant 0 : index
    %c0_4 = arith.constant 0 : index
    %4 = vector.load %arg3[%c0_2, %c0_3, %c0_4] : memref<1x32x96xbf16, #tpu.memory_space<vmem>>, vector<1x32x96xbf16>
    %5 = vector.shape_cast %4 : vector<1x32x96xbf16> to vector<32x96xbf16>
    %6 = arith.extf %5 : vector<32x96xbf16> to vector<32x96xf32>
    %c0_5 = arith.constant 0 : index
    %c0_6 = arith.constant 0 : index
    %c0_7 = arith.constant 0 : index
    %7 = vector.load %arg4[%c0_5, %c0_6, %c0_7] : memref<1x32x32xbf16, #tpu.memory_space<vmem>>, vector<1x32x32xbf16>
    %8 = vector.shape_cast %7 : vector<1x32x32xbf16> to vector<32x32xbf16>
    %9 = arith.extf %8 : vector<32x32xbf16> to vector<32x32xf32>
    %c0_8 = arith.constant 0 : index
    %c0_9 = arith.constant 0 : index
    %c0_10 = arith.constant 0 : index
    %10 = vector.load %arg5[%c0_8, %c0_9, %c0_10] : memref<1x32x128xbf16, #tpu.memory_space<vmem>>, vector<1x32x128xbf16>
    %11 = vector.shape_cast %10 : vector<1x32x128xbf16> to vector<32x128xbf16>
    %12 = arith.extf %11 : vector<32x128xbf16> to vector<32x128xf32>
    %c0_11 = arith.constant 0 : index
    %c0_12 = arith.constant 0 : index
    %c0_13 = arith.constant 0 : index
    %13 = vector.load %arg6[%c0_11, %c0_12, %c0_13] : memref<1x128x32xbf16, #tpu.memory_space<vmem>>, vector<1x128x32xbf16>
    %14 = vector.shape_cast %13 : vector<1x128x32xbf16> to vector<128x32xbf16>
    %15 = arith.extf %14 : vector<128x32xbf16> to vector<128x32xf32>
    %c0_14 = arith.constant 0 : index
    %c0_15 = arith.constant 0 : index
    %c0_16 = arith.constant 0 : index
    %16 = vector.load %arg7[%c0_14, %c0_15, %c0_16] : memref<1x8x128xf32, #tpu.memory_space<vmem>>, vector<1x8x128xf32>
    %17 = vector.shape_cast %16 : vector<1x8x128xf32> to vector<8x128xf32>
    %18 = vector.extract_strided_slice %17 {offsets = [0, 0], sizes = [1, 96], strides = [1, 1]} : vector<8x128xf32> to vector<1x96xf32>
    %19 = vector.extract_strided_slice %17 {offsets = [1, 0], sizes = [1, 32], strides = [1, 1]} : vector<8x128xf32> to vector<1x32xf32>
    %20 = vector.extract_strided_slice %17 {offsets = [2, 0], sizes = [1, 32], strides = [1, 1]} : vector<8x128xf32> to vector<1x32xf32>
    %21 = vector.extract_strided_slice %17 {offsets = [3, 0], sizes = [1, 32], strides = [1, 1]} : vector<8x128xf32> to vector<1x32xf32>
    %22 = vector.extract_strided_slice %17 {offsets = [4, 0], sizes = [1, 128], strides = [1, 1]} : vector<8x128xf32> to vector<1x128xf32>
    %23 = vector.extract_strided_slice %17 {offsets = [5, 0], sizes = [1, 32], strides = [1, 1]} : vector<8x128xf32> to vector<1x32xf32>
    %24 = vector.extract_strided_slice %17 {offsets = [6, 0], sizes = [1, 32], strides = [1, 1]} : vector<8x128xf32> to vector<1x32xf32>
    %25 = vector.extract_strided_slice %17 {offsets = [7, 0], sizes = [1, 32], strides = [1, 1]} : vector<8x128xf32> to vector<1x32xf32>
    %cst = arith.constant dense<0.000000e+00> : vector<8x96xf32>
    %26 = tpu.matmul %3, %6, %cst {dimension_numbers = #tpu.dot_dimension_numbers<[1], [0], [0], [1], [0, 0, 1, 1], [], []>} : vector<8x32xf32>, vector<32x96xf32>, vector<8x96xf32> -> vector<8x96xf32>
    %27 = vector.broadcast %18 : vector<1x96xf32> to vector<8x96xf32>
    %28 = arith.addf %26, %27 : vector<8x96xf32>
    %29 = vector.extract_strided_slice %28 {offsets = [0, 0], sizes = [8, 8], strides = [1, 1]} : vector<8x96xf32> to vector<8x8xf32>
    %30 = vector.extract_strided_slice %28 {offsets = [0, 32], sizes = [8, 8], strides = [1, 1]} : vector<8x96xf32> to vector<8x8xf32>
    %31 = vector.extract_strided_slice %28 {offsets = [0, 64], sizes = [8, 8], strides = [1, 1]} : vector<8x96xf32> to vector<8x8xf32>
    %32 = tpu.transpose %30, [1, 0] : vector<8x8xf32> -> vector<8x8xf32>
    %cst_17 = arith.constant dense<0.000000e+00> : vector<8x8xf32>
    %33 = tpu.matmul %29, %32, %cst_17 {dimension_numbers = #tpu.dot_dimension_numbers<[1], [0], [0], [1], [0, 0, 1, 1], [], []>} : vector<8x8xf32>, vector<8x8xf32>, vector<8x8xf32> -> vector<8x8xf32>
    %cst_18 = arith.constant dense<0xFF800000> : vector<8xf32>
    %34 = vector.multi_reduction <maximumf>, %33, %cst_18 [1] : vector<8x8xf32> to vector<8xf32>
    %35 = vector.shape_cast %34 : vector<8xf32> to vector<8x1xf32>
    %36 = vector.broadcast %35 : vector<8x1xf32> to vector<8x8xf32>
    %37 = arith.subf %33, %36 : vector<8x8xf32>
    %38 = math.exp %37 : vector<8x8xf32>
    %cst_19 = arith.constant dense<0.000000e+00> : vector<8xf32>
    %39 = vector.multi_reduction <add>, %38, %cst_19 [1] : vector<8x8xf32> to vector<8xf32>
    %40 = vector.shape_cast %39 : vector<8xf32> to vector<8x1xf32>
    %41 = tpu.reciprocal %40 : vector<8x1xf32> -> vector<8x1xf32>
    %42 = vector.broadcast %41 : vector<8x1xf32> to vector<8x8xf32>
    %43 = arith.mulf %38, %42 : vector<8x8xf32>
    %cst_20 = arith.constant dense<0.000000e+00> : vector<8x8xf32>
    %44 = tpu.matmul %43, %31, %cst_20 {dimension_numbers = #tpu.dot_dimension_numbers<[1], [0], [0], [1], [0, 0, 1, 1], [], []>} : vector<8x8xf32>, vector<8x8xf32>, vector<8x8xf32> -> vector<8x8xf32>
    %45 = vector.extract_strided_slice %28 {offsets = [0, 8], sizes = [8, 8], strides = [1, 1]} : vector<8x96xf32> to vector<8x8xf32>
    %46 = vector.extract_strided_slice %28 {offsets = [0, 40], sizes = [8, 8], strides = [1, 1]} : vector<8x96xf32> to vector<8x8xf32>
    %47 = vector.extract_strided_slice %28 {offsets = [0, 72], sizes = [8, 8], strides = [1, 1]} : vector<8x96xf32> to vector<8x8xf32>
    %48 = tpu.transpose %46, [1, 0] : vector<8x8xf32> -> vector<8x8xf32>
    %cst_21 = arith.constant dense<0.000000e+00> : vector<8x8xf32>
    %49 = tpu.matmul %45, %48, %cst_21 {dimension_numbers = #tpu.dot_dimension_numbers<[1], [0], [0], [1], [0, 0, 1, 1], [], []>} : vector<8x8xf32>, vector<8x8xf32>, vector<8x8xf32> -> vector<8x8xf32>
    %cst_22 = arith.constant dense<0xFF800000> : vector<8xf32>
    %50 = vector.multi_reduction <maximumf>, %49, %cst_22 [1] : vector<8x8xf32> to vector<8xf32>
    %51 = vector.shape_cast %50 : vector<8xf32> to vector<8x1xf32>
    %52 = vector.broadcast %51 : vector<8x1xf32> to vector<8x8xf32>
    %53 = arith.subf %49, %52 : vector<8x8xf32>
    %54 = math.exp %53 : vector<8x8xf32>
    %cst_23 = arith.constant dense<0.000000e+00> : vector<8xf32>
    %55 = vector.multi_reduction <add>, %54, %cst_23 [1] : vector<8x8xf32> to vector<8xf32>
    %56 = vector.shape_cast %55 : vector<8xf32> to vector<8x1xf32>
    %57 = tpu.reciprocal %56 : vector<8x1xf32> -> vector<8x1xf32>
    %58 = vector.broadcast %57 : vector<8x1xf32> to vector<8x8xf32>
    %59 = arith.mulf %54, %58 : vector<8x8xf32>
    %cst_24 = arith.constant dense<0.000000e+00> : vector<8x8xf32>
    %60 = tpu.matmul %59, %47, %cst_24 {dimension_numbers = #tpu.dot_dimension_numbers<[1], [0], [0], [1], [0, 0, 1, 1], [], []>} : vector<8x8xf32>, vector<8x8xf32>, vector<8x8xf32> -> vector<8x8xf32>
    %61 = vector.extract_strided_slice %28 {offsets = [0, 16], sizes = [8, 8], strides = [1, 1]} : vector<8x96xf32> to vector<8x8xf32>
    %62 = vector.extract_strided_slice %28 {offsets = [0, 48], sizes = [8, 8], strides = [1, 1]} : vector<8x96xf32> to vector<8x8xf32>
    %63 = vector.extract_strided_slice %28 {offsets = [0, 80], sizes = [8, 8], strides = [1, 1]} : vector<8x96xf32> to vector<8x8xf32>
    %64 = tpu.transpose %62, [1, 0] : vector<8x8xf32> -> vector<8x8xf32>
    %cst_25 = arith.constant dense<0.000000e+00> : vector<8x8xf32>
    %65 = tpu.matmul %61, %64, %cst_25 {dimension_numbers = #tpu.dot_dimension_numbers<[1], [0], [0], [1], [0, 0, 1, 1], [], []>} : vector<8x8xf32>, vector<8x8xf32>, vector<8x8xf32> -> vector<8x8xf32>
    %cst_26 = arith.constant dense<0xFF800000> : vector<8xf32>
    %66 = vector.multi_reduction <maximumf>, %65, %cst_26 [1] : vector<8x8xf32> to vector<8xf32>
    %67 = vector.shape_cast %66 : vector<8xf32> to vector<8x1xf32>
    %68 = vector.broadcast %67 : vector<8x1xf32> to vector<8x8xf32>
    %69 = arith.subf %65, %68 : vector<8x8xf32>
    %70 = math.exp %69 : vector<8x8xf32>
    %cst_27 = arith.constant dense<0.000000e+00> : vector<8xf32>
    %71 = vector.multi_reduction <add>, %70, %cst_27 [1] : vector<8x8xf32> to vector<8xf32>
    %72 = vector.shape_cast %71 : vector<8xf32> to vector<8x1xf32>
    %73 = tpu.reciprocal %72 : vector<8x1xf32> -> vector<8x1xf32>
    %74 = vector.broadcast %73 : vector<8x1xf32> to vector<8x8xf32>
    %75 = arith.mulf %70, %74 : vector<8x8xf32>
    %cst_28 = arith.constant dense<0.000000e+00> : vector<8x8xf32>
    %76 = tpu.matmul %75, %63, %cst_28 {dimension_numbers = #tpu.dot_dimension_numbers<[1], [0], [0], [1], [0, 0, 1, 1], [], []>} : vector<8x8xf32>, vector<8x8xf32>, vector<8x8xf32> -> vector<8x8xf32>
    %77 = vector.extract_strided_slice %28 {offsets = [0, 24], sizes = [8, 8], strides = [1, 1]} : vector<8x96xf32> to vector<8x8xf32>
    %78 = vector.extract_strided_slice %28 {offsets = [0, 56], sizes = [8, 8], strides = [1, 1]} : vector<8x96xf32> to vector<8x8xf32>
    %79 = vector.extract_strided_slice %28 {offsets = [0, 88], sizes = [8, 8], strides = [1, 1]} : vector<8x96xf32> to vector<8x8xf32>
    %80 = tpu.transpose %78, [1, 0] : vector<8x8xf32> -> vector<8x8xf32>
    %cst_29 = arith.constant dense<0.000000e+00> : vector<8x8xf32>
    %81 = tpu.matmul %77, %80, %cst_29 {dimension_numbers = #tpu.dot_dimension_numbers<[1], [0], [0], [1], [0, 0, 1, 1], [], []>} : vector<8x8xf32>, vector<8x8xf32>, vector<8x8xf32> -> vector<8x8xf32>
    %cst_30 = arith.constant dense<0xFF800000> : vector<8xf32>
    %82 = vector.multi_reduction <maximumf>, %81, %cst_30 [1] : vector<8x8xf32> to vector<8xf32>
    %83 = vector.shape_cast %82 : vector<8xf32> to vector<8x1xf32>
    %84 = vector.broadcast %83 : vector<8x1xf32> to vector<8x8xf32>
    %85 = arith.subf %81, %84 : vector<8x8xf32>
    %86 = math.exp %85 : vector<8x8xf32>
    %cst_31 = arith.constant dense<0.000000e+00> : vector<8xf32>
    %87 = vector.multi_reduction <add>, %86, %cst_31 [1] : vector<8x8xf32> to vector<8xf32>
    %88 = vector.shape_cast %87 : vector<8xf32> to vector<8x1xf32>
    %89 = tpu.reciprocal %88 : vector<8x1xf32> -> vector<8x1xf32>
    %90 = vector.broadcast %89 : vector<8x1xf32> to vector<8x8xf32>
    %91 = arith.mulf %86, %90 : vector<8x8xf32>
    %cst_32 = arith.constant dense<0.000000e+00> : vector<8x8xf32>
    %92 = tpu.matmul %91, %79, %cst_32 {dimension_numbers = #tpu.dot_dimension_numbers<[1], [0], [0], [1], [0, 0, 1, 1], [], []>} : vector<8x8xf32>, vector<8x8xf32>, vector<8x8xf32> -> vector<8x8xf32>
    %93 = tpu.concatenate %44, %60, %76, %92 in 1 : vector<8x8xf32>, vector<8x8xf32>, vector<8x8xf32>, vector<8x8xf32> -> vector<8x32xf32>
    %cst_33 = arith.constant dense<0.000000e+00> : vector<8x32xf32>
    %94 = tpu.matmul %93, %9, %cst_33 {dimension_numbers = #tpu.dot_dimension_numbers<[1], [0], [0], [1], [0, 0, 1, 1], [], []>} : vector<8x32xf32>, vector<32x32xf32>, vector<8x32xf32> -> vector<8x32xf32>
    %95 = vector.broadcast %19 : vector<1x32xf32> to vector<8x32xf32>
    %96 = arith.addf %94, %95 : vector<8x32xf32>
    %97 = arith.addf %3, %96 : vector<8x32xf32>
    %cst_34 = arith.constant dense<0.000000e+00> : vector<8xf32>
    %98 = vector.multi_reduction <add>, %97, %cst_34 [1] : vector<8x32xf32> to vector<8xf32>
    %99 = vector.shape_cast %98 : vector<8xf32> to vector<8x1xf32>
    %cst_35 = arith.constant 3.200000e+01 : f32
    %100 = vector.broadcast %cst_35 : f32 to vector<8x1xf32>
    %101 = arith.divf %99, %100 : vector<8x1xf32>
    %102 = arith.mulf %97, %97 : vector<8x32xf32>
    %cst_36 = arith.constant dense<0.000000e+00> : vector<8xf32>
    %103 = vector.multi_reduction <add>, %102, %cst_36 [1] : vector<8x32xf32> to vector<8xf32>
    %104 = vector.shape_cast %103 : vector<8xf32> to vector<8x1xf32>
    %cst_37 = arith.constant 3.200000e+01 : f32
    %105 = vector.broadcast %cst_37 : f32 to vector<8x1xf32>
    %106 = arith.divf %104, %105 : vector<8x1xf32>
    %107 = vector.broadcast %101 : vector<8x1xf32> to vector<8x32xf32>
    %108 = arith.subf %97, %107 : vector<8x32xf32>
    %109 = arith.mulf %101, %101 : vector<8x1xf32>
    %110 = arith.subf %106, %109 : vector<8x1xf32>
    %cst_38 = arith.constant 9.99999974E-6 : f32
    %111 = vector.broadcast %cst_38 : f32 to vector<8x1xf32>
    %112 = arith.addf %110, %111 : vector<8x1xf32>
    %113 = math.rsqrt %112 : vector<8x1xf32>
    %114 = vector.broadcast %113 : vector<8x1xf32> to vector<8x32xf32>
    %115 = arith.mulf %108, %114 : vector<8x32xf32>
    %116 = vector.broadcast %20 : vector<1x32xf32> to vector<8x32xf32>
    %117 = arith.mulf %115, %116 : vector<8x32xf32>
    %118 = vector.broadcast %21 : vector<1x32xf32> to vector<8x32xf32>
    %119 = arith.addf %117, %118 : vector<8x32xf32>
    %cst_39 = arith.constant dense<0.000000e+00> : vector<8x128xf32>
    %120 = tpu.matmul %119, %12, %cst_39 {dimension_numbers = #tpu.dot_dimension_numbers<[1], [0], [0], [1], [0, 0, 1, 1], [], []>} : vector<8x32xf32>, vector<32x128xf32>, vector<8x128xf32> -> vector<8x128xf32>
    %121 = vector.broadcast %22 : vector<1x128xf32> to vector<8x128xf32>
    %122 = arith.addf %120, %121 : vector<8x128xf32>
    %cst_40 = arith.constant 0.000000e+00 : f32
    %123 = vector.broadcast %cst_40 : f32 to vector<8x128xf32>
    %124 = arith.maximumf %122, %123 : vector<8x128xf32>
    %cst_41 = arith.constant dense<0.000000e+00> : vector<8x32xf32>
    %125 = tpu.matmul %124, %15, %cst_41 {dimension_numbers = #tpu.dot_dimension_numbers<[1], [0], [0], [1], [0, 0, 1, 1], [], []>} : vector<8x128xf32>, vector<128x32xf32>, vector<8x32xf32> -> vector<8x32xf32>
    %126 = vector.broadcast %23 : vector<1x32xf32> to vector<8x32xf32>
    %127 = arith.addf %125, %126 : vector<8x32xf32>
    %128 = arith.addf %119, %127 : vector<8x32xf32>
    %cst_42 = arith.constant dense<0.000000e+00> : vector<8xf32>
    %129 = vector.multi_reduction <add>, %128, %cst_42 [1] : vector<8x32xf32> to vector<8xf32>
    %130 = vector.shape_cast %129 : vector<8xf32> to vector<8x1xf32>
    %cst_43 = arith.constant 3.200000e+01 : f32
    %131 = vector.broadcast %cst_43 : f32 to vector<8x1xf32>
    %132 = arith.divf %130, %131 : vector<8x1xf32>
    %133 = arith.mulf %128, %128 : vector<8x32xf32>
    %cst_44 = arith.constant dense<0.000000e+00> : vector<8xf32>
    %134 = vector.multi_reduction <add>, %133, %cst_44 [1] : vector<8x32xf32> to vector<8xf32>
    %135 = vector.shape_cast %134 : vector<8xf32> to vector<8x1xf32>
    %cst_45 = arith.constant 3.200000e+01 : f32
    %136 = vector.broadcast %cst_45 : f32 to vector<8x1xf32>
    %137 = arith.divf %135, %136 : vector<8x1xf32>
    %138 = vector.broadcast %132 : vector<8x1xf32> to vector<8x32xf32>
    %139 = arith.subf %128, %138 : vector<8x32xf32>
    %140 = arith.mulf %132, %132 : vector<8x1xf32>
    %141 = arith.subf %137, %140 : vector<8x1xf32>
    %cst_46 = arith.constant 9.99999974E-6 : f32
    %142 = vector.broadcast %cst_46 : f32 to vector<8x1xf32>
    %143 = arith.addf %141, %142 : vector<8x1xf32>
    %144 = math.rsqrt %143 : vector<8x1xf32>
    %145 = vector.broadcast %144 : vector<8x1xf32> to vector<8x32xf32>
    %146 = arith.mulf %139, %145 : vector<8x32xf32>
    %147 = vector.broadcast %24 : vector<1x32xf32> to vector<8x32xf32>
    %148 = arith.mulf %146, %147 : vector<8x32xf32>
    %149 = vector.broadcast %25 : vector<1x32xf32> to vector<8x32xf32>
    %150 = arith.addf %148, %149 : vector<8x32xf32>
    %c0_47 = arith.constant 0 : index
    %c0_48 = arith.constant 0 : index
    %151 = vector.load %arg9[%c0_47, %c0_48] : memref<8x32xf32, #tpu.memory_space<vmem>>, vector<8x32xf32>
    tpu.vector_store %arg9[%c0_47, %c0_48], %150 {strides = array<i32>} : memref<8x32xf32, #tpu.memory_space<vmem>>, vector<8x32xf32>,
    %c1_i32 = arith.constant 1 : i32
    %152 = arith.cmpi eq, %arg1, %c1_i32 : i32
    %153 = arith.extui %152 : i1 to i32
    %c0_i32_49 = arith.constant 0 : i32
    %154 = arith.cmpi ne, %153, %c0_i32_49 : i32
    scf.if %154 {
      %c0_50 = arith.constant 0 : index
      %c0_51 = arith.constant 0 : index
      %c0_52 = arith.constant 0 : index
      %155 = vector.load %arg8[%c0_50, %c0_51, %c0_52] : memref<1x8x32xf32, #tpu.memory_space<vmem>>, vector<1x8x32xf32>
      %156 = vector.shape_cast %155 : vector<1x8x32xf32> to vector<8x32xf32>
      %157 = vector.shape_cast %150 : vector<8x32xf32> to vector<1x8x32xf32>
      tpu.vector_store %arg8[%c0_50, %c0_51, %c0_52], %157 {strides = array<i32>} : memref<1x8x32xf32, #tpu.memory_space<vmem>>, vector<1x8x32xf32>,
    } else {
    }
    return
  }
  func.func @transform_0(%arg0: i32, %arg1: i32) -> (i32, i32, i32) {
    %c0_i32 = arith.constant 0 : i32
    %c0_i32_0 = arith.constant 0 : i32
    %c0_i32_1 = arith.constant 0 : i32
    return %arg0, %c0_i32, %c0_i32_0 : i32, i32, i32
  }
  func.func @transform_1(%arg0: i32, %arg1: i32) -> (i32, i32, i32) {
    %c0_i32 = arith.constant 0 : i32
    %c0_i32_0 = arith.constant 0 : i32
    %c0_i32_1 = arith.constant 0 : i32
    return %arg1, %c0_i32, %c0_i32_0 : i32, i32, i32
  }
  func.func @transform_2(%arg0: i32, %arg1: i32) -> (i32, i32, i32) {
    %c0_i32 = arith.constant 0 : i32
    %c0_i32_0 = arith.constant 0 : i32
    %c0_i32_1 = arith.constant 0 : i32
    return %arg1, %c0_i32, %c0_i32_0 : i32, i32, i32
  }
  func.func @transform_3(%arg0: i32, %arg1: i32) -> (i32, i32, i32) {
    %c0_i32 = arith.constant 0 : i32
    %c0_i32_0 = arith.constant 0 : i32
    %c0_i32_1 = arith.constant 0 : i32
    return %arg1, %c0_i32, %c0_i32_0 : i32, i32, i32
  }
  func.func @transform_4(%arg0: i32, %arg1: i32) -> (i32, i32, i32) {
    %c0_i32 = arith.constant 0 : i32
    %c0_i32_0 = arith.constant 0 : i32
    %c0_i32_1 = arith.constant 0 : i32
    return %arg1, %c0_i32, %c0_i32_0 : i32, i32, i32
  }
  func.func @transform_5(%arg0: i32, %arg1: i32) -> (i32, i32, i32) {
    %c0_i32 = arith.constant 0 : i32
    %c0_i32_0 = arith.constant 0 : i32
    %c0_i32_1 = arith.constant 0 : i32
    return %arg1, %c0_i32, %c0_i32_0 : i32, i32, i32
  }
  func.func @transform_6(%arg0: i32, %arg1: i32) -> (i32, i32, i32) {
    %c0_i32 = arith.constant 0 : i32
    %c0_i32_0 = arith.constant 0 : i32
    %c0_i32_1 = arith.constant 0 : i32
    return %arg0, %c0_i32, %c0_i32_0 : i32, i32, i32
  }
}

</mosaic_0001>

<bundles_post_ra>
// kernel: tpu_custom_call.1
= control target key start
LH: loop header
LB: loop body
LE: loop exit
PB: predicated region body
PF: predicated region fallthrough
CT: control target
= control target key end

     0   :  { %s2458_s0 = inlined_call_operand.vmem [shape: f32[2,8,32], index: 0, kind: input, shape index: {}]   ;;  %s2459_s1 = inlined_call_operand.vmem [shape: bf16[2,32,96], index: 1, kind: input, shape index: {}]   ;;  %s2460_s2 = inlined_call_operand.vmem [shape: bf16[2,32,32], index: 2, kind: input, shape index: {}]   ;;  %s2461_s3 = inlined_call_operand.vmem [shape: bf16[2,32,128], index: 3, kind: input, shape index: {}]   ;;  %s2462_s4 = inlined_call_operand.vmem [shape: bf16[2,128,32], index: 4, kind: input, shape index: {}]   ;;  %s2463_s5 = inlined_call_operand.vmem [shape: f32[2,8,128], index: 5, kind: input, shape index: {}]   ;;  %s2464_s6 = inlined_call_operand.hbm [shape: f32[2,8,32], index: 6, kind: output, shape index: {}]  }
   0x1   :  { %2472 = sst [smem:[#allocation14_spill]] %s2458_s0 }
   0x2   :  { %11 = vsyncpa [#allocation4], 0 }
   0x3   :  { %13 = vsyncpa [#allocation4 + $0x1], 0  ;;  %s2170_s21 = smov 0   ;;  %s2172_s22 = smov 0  }
   0x4   :  { %s2174_s23 = smov 0   ;;  %s2176_s24 = smov 0  }
   0x5   :  { %s2178_s25 = smov 0   ;;  %s2180_s26 = smov 0  }
   0x6   :  { %s2182_s27 = smov 0   ;;  %s2184_s28 = smov 0  }
   0x7 LB: > { %2473 = sst [smem:[#allocation6_spill]] %s2087_s21  ;;  %s1608_s29 = sadd.s32 4294967295, %s2115_s28   ;;  %s2115_s28 = sphi %s2184_s28, %s19_s28   ;;  %s2111_s27 = sphi %s2182_s27, %s2492_s27   ;;  %s2107_s26 = sphi %s2180_s26, %s2491_s26   ;;  %s2103_s25 = sphi %s2178_s25, %s2490_s25   ;;  %s2099_s24 = sphi %s2176_s24, %s2489_s24   ;;  %s2095_s23 = sphi %s2174_s23, %s2488_s23   ;;  %s2091_s22 = sphi %s2172_s22, %s2494_s22   ;;  %s2087_s21 = sphi %s2170_s21, %s2493_s21  }
   0x8   : > { %2474 = sst [smem:[#allocation7_spill]] %s2095_s23  ;;  %s1609_s30 = sadd.s32 4294967294, %s2115_s28  }
   0x9   : > { %2475 = sst [smem:[#allocation8_spill]] %s2107_s26  ;;  %s28_s7 = sadd.s32 1, %s2107_s26 }
   0xa   : > { %2476 = sst [smem:[#allocation9_spill]] %s2111_s27  ;;  %p29_p0 = scmp.ge.s32.totalorder %s28_s7, 2 }
   0xb   : > { %s31_s8 = sadd.s32 1, %s2111_s27  ;;  %p204_p1 = scmp.ne.s32.totalorder %s2095_s23, %s2091_s22 }
   0xc   : > { %p205_p2 = scmp.eq.s32.totalorder %s1608_s29, 3  ;;  %s2496_s7 = smov (%p29_p0, %s28_s7), 0 }
   0xd   : > { %2477 = sst [smem:[#allocation10_spill]] %s2496_s7  ;;  %s2498_s8 = smov (!%p29_p0, %s31_s8), %s2111_s27 }
   0xe   : > { %p2219_p3 = por %p205_p2, %p204_p1  ;;  %p210_p4 = scmp.ne.s32.totalorder %s2091_s22, %s2087_s21 }
   0xf   : > { %p33_p5 = scmp.ge.s32.totalorder %s2498_s8, 2  ;;  %p211_p6 = scmp.eq.s32.totalorder %s1609_s30, 3 }
  0x10   : > { %p1612_p7 = scmp.ge.s32.totalorder %s2115_s28, 1  ;;  %p275_p8 = scmp.lt.s32.totalorder %s2115_s28, 5 }
  0x11   : > { %s2500_s8 = smov (%p33_p5, %s2498_s8), 0  ;;  %p2229_p9 = por %p211_p6, %p210_p4 }
  0x12   : > { %2479 = sst [smem:[#allocation11_spill]] %s2500_s8  ;;  %p276_p10 = pnand %p1612_p7, %p275_p8 }
  0x13   : > { %s2480_s10 = scalar_select %p2229_p9, 1, 0 }
  0x14   : > { %s191_s11 = ssub.s32 %s2111_s27, %s2500_s8  ;;  %s194_s12 = sadd.s32 1, %s2095_s23 }
  0x15   : > { %2481 = sst [smem:[#allocation12_spill]] %s2480_s10  ;;  %p192_p11 = scmp.eq.s32.totalorder %s191_s11, 0 }
  0x16   : > { %279 = sbr.rel (%p276_p10) target bundleno = 2302 (0x8fe), region = 44  ;;  %s2468_s14 = sand.u32 (!%p276_p10), 1, %s2091_s22  }
  0x17   : > { %s2237_s13 = scalar_select %p192_p11, %s2095_s23, %s194_s12  }
  0x18   : > { %p328_p12 = scmp.lt.s32.totalorder (!%p276_p10), %s2103_s25, 1  ;;  %s2243_s15 = sshll.u32 (!%p276_p10), %s2468_s14, 3 }
  0x19   : > { %2482 = sst [smem:[#allocation13_spill]] %s2237_s13  ;;  %p332_p13 = scmp.lt.s32.totalorder (!%p276_p10), %s2099_s24, 1 }
  0x1a   : > { %s2483_s0 = sld [smem:[#allocation14_spill]] (!%p276_p10)  ;;  %p1624_p0 = scmp.ne.s32.totalorder (!%p276_p10), %s2099_s24, 0 }
  0x1d   : > { %s329_s16 = scalar_select %p328_p12, %s2103_s25, 1 }
  0x1e   : > { %s333_s17 = scalar_select %p332_p13, %s2099_s24, 1 }
  0x1f   : > { %s1614_s18 = sshll.u32 %s329_s16, 3  ;;  %359 = sbr.rel (%p1624_p0) target bundleno = 38 (0x26), region = 48  ;;  %vm361_vm0 = vcmask (!%p1624_p0), 261120  }
  0x20   : > { %s331_s29 = scalar_lea.vmem %s2483_s0, %s1614_s18  ;;  %s1645_s30 = sshll.u32 %s333_s17, 4 }
  0x21   : > { %s336_s8 = scalar_lea.vmem %s2459_s1, %s1645_s30  ;;  %s2257_s26 = scalar_lea.vmem %s2460_s2, %s1645_s30  ;;  %v360_v0 = vld [vmem:[%s331_s29] sm:$0xff] (!%p1624_p0) }
  0x22   : > { %s2262_s23 = scalar_lea.vmem %s2461_s3, %s1645_s30  ;;  %s1648_s16 = sshll.u32 %s333_s17, 6  ;;  %362 = vst.msk [vmem:[#allocation2] sm:$0xff] (!%p1624_p0), %vm361_vm0, %v360_v0 }
  0x23   : > { %s2267_s18 = scalar_lea.vmem %s2462_s4, %s1648_s16  ;;  %s1623_s19 = sshll.u32 %s333_s17, 3 }
  0x24   : > { %s355_s12 = scalar_lea.vmem %s2463_s5, %s1623_s19  ;;  %s327_s0 = scalar_lea.vmem [#allocation3], %s2243_s15 }
  0x26 PF: > { %v1650_v1 = vld [vmem:[%s336_s8] sm:$0xff]   ;;  %v2117_v2 = vmov 0.0|0.0   ;;  %vm2118_vm1 = vmmov 0   ;;  %v2119_v3 = vmov 0.0   ;;  %v1705_v4 = vld [vmem:[%s336_s8 + $0x8] sm:$0xff]   ;;  %vm425_vm2 = vcmask 261120  }
  0x27   : > { %1871 = vmatprep.subr.bf16.mxu1 %v2117_v2  ;;  %1771 = vmatprep.mubr.msk.f32.mxu1 %vm2118_vm1, %v2119_v3  ;;  %v421_v6 = vlaneseq  ;;  %v2291_v9 = vld [vmem:[%s355_s12] sm:$0xff]  ;;  %s2120_s21 = smov 120   ;;  %s2121_s27 = smov 96   ;;  %vm502_vm3 = vcmask 64512   ;;  %vm1172_vm4 = vcmask 130048   ;;  %vm1174_vm5 = vcmask 195584  }
  0x28   : > { %1873 = vmatpush3.bf16.msra.mxu1 %v1650_v1  ;;  %1784 = vmatprep.subr.mxu0 %v2119_v3  ;;  %s2122_s7 = smov 80   ;;  %s2123_s8 = smov 88  }
  0x29   : > { %1874 = vmatprep.subr.bf16.mxu1 %v2117_v2  ;;  %1786 = vmatprep.mubr.msk.f32.mxu0 %vm2118_vm1, %v2119_v3  ;;  %v2281_v5 = vld [vmem:[#allocation2] sm:$0xff]  ;;  %v2288_v7 = vshrl.u32 %v421_v6, 7  ;;  %s2124_s10 = smov 72   ;;  %s2125_s13 = smov 112  }
  0x2a   : > { %s2126_s14 = smov 104   ;;  %s2127_s17 = smov 56  }
  0x2b   : > { %v423_v8 = vsub.s32 0, %v2288_v7  ;;  %s2128_s29 = smov 64   ;;  %s2129_s30 = smov 48  }
  0x2c   : > { %1876 = vmatpush3.bf16.msra.mxu1 %v1705_v4  ;;  %s2130_s16 = smov 40   ;;  %s2131_s19 = smov 8  }
  0x2d   : > { %1774 = vmatprep.subr.mxu1 %v2119_v3  ;;  %v424_v10 = vrot.slane %v2291_v9, %v423_v8  ;;  %s2132_s20 = smov 16   ;;  %s2133_s11 = smov 24  }
  0x2e   : > { %p1640_p1 = scmp.ne.s32.totalorder %s2099_s24, 1 }
  0x2f   : > { %1772 = vmatmul.mubr.msk.f32.vlgmr.msra.gmra.mrb[0].mxu1 %vm425_vm2, %v2281_v5 }
  0x30   : > { %1776 = vmatprep.mubr.msk.f32.mxu1 %vm2118_vm1, %v2119_v3 }
 0x102   : > { %v495_v11 = vpop.f32.mrb[0].mxu1 }
 0x103   : > { %v2294_v12 = vadd.f32 %v495_v11, %v424_v10  ;;  %v1773_v13 = vpop.f32.mrb[1].mxu1  ;;  %v1658_v10 = vld [vmem:[%s2257_s26] sm:$0xff]  }
 0x105   : > { %664 = vrot.lane.b32.xlu1 %v2294_v12, %s2120_s21  ;;  %500 = vrot.lane.b32.xlu0 %v2294_v12, %s2121_s27 }
 0x109   : > { %831 = vrot.lane.b32.xlu1 %v2294_v12, %s2122_s7  ;;  %666 = vrot.lane.b32.xlu0 %v2294_v12, %s2123_s8 }
 0x10d   : > { %996 = vrot.lane.b32.xlu1 %v2294_v12, %s2124_s10  ;;  %829 = vrot.lane.b32.xlu0 %v2294_v12, %s2125_s13 }
 0x111   : > { %994 = vrot.lane.b32.xlu0 %v2294_v12, %s2126_s14 }
 0x177   : > { %v665_v14 = vpop.permute.xlu1 %664  ;;  %v501_v15 = vpop.permute.xlu0 %500 }
 0x178   : > { %1775 = vmatpush3.xpose.msk.msra.mxu1 %vm502_vm3, %v501_v15  ;;  %v1706_v15 = vld [vmem:[%s2257_s26 + $0x8] sm:$0xff]  }
 0x179   : > { %1779 = vmatprep.subr.mxu1 %v2119_v3 }
 0x17b   : > { %1777 = vmatmul.mubr.msk.f32.vlgmr.msra.gmra.mrb[2].mxu1 %vm502_vm3, %v2294_v12  ;;  %v667_v16 = vpop.permute.xlu0 %666  ;;  %v832_v17 = vpop.permute.xlu1 %831 }
 0x17c   : > { %1785 = vmatpush3.xpose.msk.msra.mxu0 %vm502_vm3, %v667_v16  ;;  %1781 = vmatprep.mubr.msk.f32.mxu1 %vm2118_vm1, %v2119_v3 }
 0x17d   : > { %1794 = vmatprep.subr.mxu0 %v2119_v3 }
 0x17f   : > { %1787 = vmatmul.mubr.msk.f32.vlgmr.msra.gmra.mrb[0].mxu0 %vm502_vm3, %v665_v14  ;;  %v830_v18 = vpop.permute.xlu0 %829  ;;  %v997_v19 = vpop.permute.xlu1 %996 }
 0x180   : > { %1795 = vmatpush3.xpose.msk.msra.mxu0 %vm502_vm3, %v832_v17  ;;  %1796 = vmatprep.mubr.msk.f32.mxu0 %vm2118_vm1, %v2119_v3 }
 0x181   : > { %1804 = vmatprep.subr.mxu0 %v2119_v3 }
 0x183   : > { %1797 = vmatmul.mubr.msk.f32.vlgmr.msra.gmra.mrb[2].mxu0 %vm502_vm3, %v830_v18  ;;  %v995_v20 = vpop.permute.xlu0 %994 }
 0x184   : > { %1805 = vmatpush3.xpose.msk.msra.mxu0 %vm502_vm3, %v997_v19  ;;  %1806 = vmatprep.mubr.msk.f32.mxu0 %vm2118_vm1, %v2119_v3 }
 0x185   : > { %1889 = vmatprep.subr.bf16.mxu0 %v2117_v2 }
 0x187   : > { %1807 = vmatmul.mubr.msk.f32.vlgmr.msra.gmra.mrb[4].mxu0 %vm502_vm3, %v995_v20 }
 0x188   : > { %1868 = vmatprep.mubr.msk.f32.mxu0 %vm2118_vm1, %v2119_v3 }
 0x24e   : > { %v573_v21 = vpop.f32.mrb[2].mxu1 }
 0x24f   : > { %v1778_v22 = vpop.f32.mrb[3].mxu1  ;;  %v577_v23 = vsel %vm502_vm3, %v573_v21, -inf }
 0x250   : > { %578 = vmax.xlane.f32.xlu1 %v577_v23 }
 0x252   : > { %v738_v24 = vpop.f32.mrb[0].mxu0 }
 0x253   : > { %v1788_v25 = vpop.f32.mrb[1].mxu0  ;;  %v742_v26 = vsel %vm502_vm3, %v738_v24, -inf }
 0x254   : > { %743 = vmax.xlane.f32.xlu0 %v742_v26  ;;  %v1178_v26 = vsub.s32 1, %v2288_v7 }
 0x256   : > { %v903_v27 = vpop.f32.mrb[2].mxu0 }
 0x257   : > { %v1798_v28 = vpop.f32.mrb[3].mxu0  ;;  %v907_v29 = vsel %vm502_vm3, %v903_v27, -inf }
 0x258   : > { %908 = vmax.xlane.f32.xlu0 %v907_v29 }
 0x25a   : > { %v1068_v30 = vpop.f32.mrb[4].mxu0 }
 0x25b   : > { %v1808_v31 = vpop.f32.mrb[5].mxu0  ;;  %v1072_v32 = vsel %vm502_vm3, %v1068_v30, -inf }
 0x25c   : > { %1073 = vmax.xlane.f32.xlu1 %v1072_v32 }
 0x26d   : > { %753 = vrot.lane.b32.xlu1 %v2294_v12, %s2127_s17 }
 0x2dd   : > { %v579_v33 = vpop.xlane.xlu1 %578 }
 0x2de   : > { %v580_v34 = vsub.f32 %v573_v21, %v579_v33 }
 0x2e0   : > { %v581_v35 = vmul.f32 1.442695, %v580_v34 }
 0x2e1   : > { %v744_v36 = vpop.xlane.xlu0 %743 }
 0x2e2   : > { %2001 = vpow2.f32 %v581_v35  ;;  %v745_v37 = vsub.f32 %v738_v24, %v744_v36  ;;  %v1707_v35 = vld [vmem:[%s2262_s23 + $0x8] sm:$0xff]   ;;  %v1674_v36 = vld [vmem:[%s2267_s18] sm:$0xff]  }
 0x2e3   : > { %1891 = vmatpush3.bf16.msra.mxu0 %v1674_v36 }
 0x2e4   : > { %v746_v38 = vmul.f32 1.442695, %v745_v37  ;;  %1892 = vmatprep.subr.bf16.mxu0 %v2117_v2  ;;  %v1709_v37 = vld [vmem:[%s2267_s18 + $0x10] sm:$0xff]  }
 0x2e5   : > { %v909_v48 = vpop.xlane.xlu0 %908 }
 0x2e6   : > { %2003 = vpow2.f32 %v746_v38  ;;  %v910_v49 = vsub.f32 %v903_v27, %v909_v48  ;;  %v1179_v27 = vrot.slane %v2291_v9, %v1178_v26  ;;  %v1710_v38 = vld [vmem:[%s2267_s18 + $0x18] sm:$0xff]  }
 0x2e8   : > { %v911_v50 = vmul.f32 1.442695, %v910_v49  ;;  %v1272_v49 = vsub.s32 2, %v2288_v7 }
 0x2e9   : > { %v1074_v39 = vpop.xlane.xlu1 %1073 }
 0x2ea   : > { %v1075_v40 = vsub.f32 %v1068_v30, %v1074_v39  ;;  %v1711_v39 = vld [vmem:[%s2267_s18 + $0x20] sm:$0xff]  }
 0x2ec   : > { %v2002_v41 = vpop.eup %2001  ;;  %v1076_v42 = vmul.f32 1.442695, %v1075_v40  ;;  %v1712_v40 = vld [vmem:[%s2267_s18 + $0x28] sm:$0xff]  }
 0x2ed   : > { %v583_v43 = vsel %vm502_vm3, %v2002_v41, 0.0  ;;  %v754_v53 = vpop.permute.xlu1 %753 }
 0x2ee   : > { %2005 = vpow2.f32 %v1076_v42  ;;  %584 = vadd.xlane.f32.xlu0 %v583_v43 }
 0x2ef   : > { %2007 = vpow2.f32 %v911_v50  ;;  %v1277_v50 = vsub.s32 3, %v2288_v7 }
 0x2f0   : > { %v2004_v44 = vpop.eup %2003 }
 0x2f1   : > { %v748_v45 = vsel %vm502_vm3, %v2004_v44, 0.0 }
 0x2f2   : > { %749 = vadd.xlane.f32.xlu1 %v748_v45 }
 0x2f8   : > { %v2006_v46 = vpop.eup %2005 }
 0x2f9   : > { %v1078_v47 = vsel %vm502_vm3, %v2006_v46, 0.0  ;;  %v2008_v51 = vpop.eup %2007 }
 0x2fa   : > { %1079 = vadd.xlane.f32.xlu1 %v1078_v47  ;;  %v913_v52 = vsel %vm502_vm3, %v2008_v51, 0.0 }
 0x304   : > { %588 = vrot.lane.b32.xlu0 %v2294_v12, %s2128_s29 }
 0x30b   : > { %918 = vrot.lane.b32.xlu1 %v2294_v12, %s2129_s30 }
 0x323   : > { %914 = vadd.xlane.f32.xlu0 %v913_v52  ;;  %v1273_v52 = vrot.slane %v2291_v9, %v1272_v49 }
 0x339   : > { %1083 = vrot.lane.b32.xlu0 %v2294_v12, %s2130_s16 }
 0x37b   : > { %v585_v54 = vpop.xlane.xlu0 %584 }
 0x37c   : > { %2009 = vrcp.f32 %v585_v54 }
 0x37f   : > { %v589_v55 = vpop.permute.xlu0 %588  ;;  %v750_v56 = vpop.xlane.xlu1 %749 }
 0x380   : > { %2011 = vrcp.f32 %v750_v56  ;;  %1780 = vmatpush3.msra.mxu1 %v589_v55 }
 0x381   : > { %1789 = vmatprep.subr.mxu1 %v2119_v3 }
 0x386   : > { %v2010_v57 = vpop.eup %2009 }
 0x387   : > { %v587_v58 = vmul.f32 %v2010_v57, %v2002_v41  ;;  %v1080_v59 = vpop.xlane.xlu1 %1079  ;;  %v1713_v41 = vld [vmem:[%s2267_s18 + $0x30] sm:$0xff]   ;;  %v1714_v57 = vld [vmem:[%s2267_s18 + $0x38] sm:$0xff]  }
 0x389   : > { %1782 = vmatmul.mubr.msk.f32.vlgmr.msra.gmra.mrb[4].mxu1 %vm502_vm3, %v587_v58  ;;  %v1282_v58 = vsub.s32 4, %v2288_v7 }
 0x38a   : > { %v2012_v60 = vpop.eup %2011  ;;  %1790 = vmatpush3.msra.mxu1 %v754_v53  ;;  %1791 = vmatprep.mubr.msk.f32.mxu1 %vm2118_vm1, %v2119_v3 }
 0x38b   : > { %v752_v61 = vmul.f32 %v2012_v60, %v2004_v44  ;;  %v919_v62 = vpop.permute.xlu1 %918  ;;  %1799 = vmatprep.subr.mxu1 %v2119_v3 }
 0x38d   : > { %1792 = vmatmul.mubr.msk.f32.vlgmr.msra.gmra.mrb[6].mxu1 %vm502_vm3, %v752_v61 }
 0x38e   : > { %1800 = vmatpush3.msra.mxu1 %v919_v62  ;;  %1801 = vmatprep.mubr.msk.f32.mxu1 %vm2118_vm1, %v2119_v3 }
 0x38f   : > { %1809 = vmatprep.subr.mxu1 %v2119_v3 }
 0x3b0   : > { %v915_v63 = vpop.xlane.xlu0 %914 }
 0x3b1   : > { %2013 = vrcp.f32 %v915_v63 }
 0x3b2   : > { %2015 = vrcp.f32 %v1080_v59  ;;  %v1283_v59 = vrot.slane %v2291_v9, %v1282_v58 }
 0x3b4   : > { %v1084_v6 = vpop.permute.xlu0 %1083 }
 0x3bb   : > { %v2014_v0 = vpop.eup %2013 }
 0x3bc   : > { %v917_v1 = vmul.f32 %v2014_v0, %v2008_v51  ;;  %v2016_v4 = vpop.eup %2015  ;;  %v1360_v0 = vsub.s32 5, %v2288_v7 }
 0x3bd   : > { %v1082_v8 = vmul.f32 %v2016_v4, %v2006_v46 }
 0x3be   : > { %1802 = vmatmul.mubr.msk.f32.vlgmr.msra.gmra.mrb[8].mxu1 %vm502_vm3, %v917_v1  ;;  %v1361_v1 = vrot.slane %v2291_v9, %v1360_v0 }
 0x3bf   : > { %1810 = vmatpush3.msra.mxu1 %v1084_v6  ;;  %1811 = vmatprep.mubr.msk.f32.mxu1 %vm2118_vm1, %v2119_v3 }
 0x3c0   : > { %1877 = vmatprep.subr.bf16.mxu1 %v2117_v2 }
 0x3c2   : > { %1812 = vmatmul.mubr.msk.f32.vlgmr.msra.gmra.mrb[10].mxu1 %vm502_vm3, %v1082_v8 }
 0x3c3   : > { %1822 = vmatprep.mubr.msk.f32.mxu1 %vm2118_vm1, %v2119_v3  ;;  %1879 = vmatpush3.bf16.msra.mxu1 %v1658_v10 }
 0x3c4   : > { %1880 = vmatprep.subr.bf16.mxu1 %v2117_v2 }
 0x3c7   : > { %1882 = vmatpush3.bf16.msra.mxu1 %v1706_v15 }
 0x3c8   : > { %1883 = vmatprep.subr.bf16.mxu1 %v2117_v2 }
 0x45c   : > { %v660_v11 = vpop.f32.mrb[4].mxu1 }
 0x45d   : > { %v1783_v12 = vpop.f32.mrb[5].mxu1 }
 0x460   : > { %v825_v13 = vpop.f32.mrb[6].mxu1 }
 0x461   : > { %1160 = vrot.lane.b32.xlu1 %v825_v13, %s2131_s19  ;;  %v1793_v14 = vpop.f32.mrb[7].mxu1 }
 0x491   : > { %v990_v16 = vpop.f32.mrb[8].mxu1 }
 0x492   : > { %1164 = vrot.lane.b32.xlu0 %v990_v16, %s2132_s20  ;;  %v1803_v17 = vpop.f32.mrb[9].mxu1 }
 0x495   : > { %v1155_v18 = vpop.f32.mrb[10].mxu1 }
 0x496   : > { %1168 = vrot.lane.b32.xlu1 %v1155_v18, %s2133_s11  ;;  %v1813_v19 = vpop.f32.mrb[11].mxu1 }
 0x4d3   : > { %v1161_v20 = vpop.permute.xlu1 %1160 }
 0x4d4   : > { %v1171_v22 = vsel %vm502_vm3, %v660_v11, %v1161_v20 }
 0x504   : > { %v1165_v21 = vpop.permute.xlu0 %1164 }
 0x505   : > { %v1173_v23 = vsel %vm1172_vm4, %v1171_v22, %v1165_v21  ;;  %v1450_v21 = vsub.s32 6, %v2288_v7  ;;  %v1455_v22 = vsub.s32 7, %v2288_v7 }
 0x507   : > { %v1456_v26 = vrot.slane %v2291_v9, %v1455_v22 }
 0x508   : > { %v1169_v24 = vpop.permute.xlu1 %1168 }
 0x509   : > { %v1175_v25 = vsel %vm1174_vm5, %v1173_v23, %v1169_v24  ;;  %v1451_v24 = vrot.slane %v2291_v9, %v1450_v21 }
 0x50a   : > { %1823 = vmatmul.mubr.msk.f32.vlgmr.msra.gmra.mrb[12].mxu1 %vm425_vm2, %v1175_v25 }
 0x50b   : > { %1833 = vmatprep.mubr.msk.f32.mxu1 %vm2118_vm1, %v2119_v3  ;;  %v1666_v3 = vld [vmem:[%s2262_s23] sm:$0xff]  }
 0x50c   : > { %1885 = vmatpush3.bf16.msra.mxu1 %v1666_v3 }
 0x50d   : > { %1886 = vmatprep.subr.bf16.mxu1 %v2117_v2 }
 0x510   : > { %1888 = vmatpush3.bf16.msra.mxu1 %v1707_v35 }
 0x5dd   : > { %v1249_v28 = vpop.f32.mrb[12].mxu1 }
 0x5de   : > { %v1250_v29 = vadd.f32 %v1249_v28, %v1179_v27  ;;  %v1824_v30 = vpop.f32.mrb[13].mxu1 }
 0x5e0   : > { %v1253_v31 = vadd.f32 %v1250_v29, %v2281_v5  ;;  %v1708_v5 = vld [vmem:[%s2267_s18 + $0x8] sm:$0xff]  }
 0x5e1   : > { %1894 = vmatpush3.bf16.msra.mxu0 %v1708_v5 }
 0x5e2   : > { %v1254_v32 = vsel %vm425_vm2, %v1253_v31, 0.0  ;;  %v1259_v33 = vmul.f32 %v1253_v31, %v1253_v31  ;;  %1895 = vmatprep.subr.bf16.mxu0 %v2117_v2 }
 0x5e3   : > { %1255 = vadd.xlane.f32.xlu0 %v1254_v32 }
 0x5e4   : > { %v1260_v34 = vsel %vm425_vm2, %v1259_v33, 0.0 }
 0x5e5   : > { %1261 = vadd.xlane.f32.xlu1 %v1260_v34  ;;  %1897 = vmatpush3.bf16.msra.mxu0 %v1709_v37 }
 0x5e6   : > { %1898 = vmatprep.subr.bf16.mxu0 %v2117_v2 }
 0x5e9   : > { %1900 = vmatpush3.bf16.msra.mxu0 %v1710_v38 }
 0x5ea   : > { %1901 = vmatprep.subr.bf16.mxu0 %v2117_v2 }
 0x5ed   : > { %1903 = vmatpush3.bf16.msra.mxu0 %v1711_v39 }
 0x5ee   : > { %1904 = vmatprep.subr.bf16.mxu0 %v2117_v2 }
 0x5f1   : > { %1906 = vmatpush3.bf16.msra.mxu0 %v1712_v40 }
 0x5f2   : > { %1907 = vmatprep.subr.bf16.mxu0 %v2117_v2 }
 0x5f5   : > { %1909 = vmatpush3.bf16.msra.mxu0 %v1713_v41 }
 0x5f6   : > { %1910 = vmatprep.subr.bf16.mxu0 %v2117_v2  ;;  %v1278_v2 = vrot.slane %v2291_v9, %v1277_v50 }
 0x5f9   : > { %1912 = vmatpush3.bf16.msra.mxu0 %v1714_v57 }
 0x670   : > { %v1256_v42 = vpop.xlane.xlu0 %1255 }
 0x671   : > { %v1258_v43 = vmul.f32 0.03125, %v1256_v42 }
 0x672   : > { %v1262_v44 = vpop.xlane.xlu1 %1261 }
 0x673   : > { %v1265_v45 = vmul.f32 %v1258_v43, %v1258_v43  ;;  %v1263_v46 = vmul.f32 0.03125, %v1262_v44  ;;  %v1264_v51 = vsub.f32 %v1253_v31, %v1258_v43 }
 0x675   : > { %v1266_v47 = vsub.f32 %v1263_v46, %v1265_v45 }
 0x677   : > { %v1267_v48 = vadd.f32 1e-05, %v1266_v47 }
 0x679   : > { %2017 = vrsqrt.f32 %v1267_v48 }
 0x683   : > { %v2018_v53 = vpop.eup %2017 }
 0x684   : > { %v1269_v54 = vmul.f32 %v2018_v53, %v1264_v51 }
 0x686   : > { %v1274_v55 = vmul.f32 %v1273_v52, %v1269_v54 }
 0x688   : > { %v1279_v56 = vadd.f32 %v1278_v2, %v1274_v55 }
 0x68a   : > { %1834 = vmatmul.mubr.msk.f32.vlgmr.msra.gmra.mrb[14].mxu1 %vm425_vm2, %v1279_v56 }
 0x75d   : > { %v1353_v60 = vpop.f32.mrb[14].mxu1 }
 0x75e   : > { %v1354_v61 = vadd.f32 %v1353_v60, %v1283_v59  ;;  %v1835_v62 = vpop.f32.mrb[15].mxu1 }
 0x760   : > { %v1357_v63 = vmax.f32 %v1354_v61, 0.0 }
 0x762   : > { %1869 = vmatmul.mubr.f32.vlgmr.msra.gmra.mrb[6].mxu0 %v1357_v63 }
 0x835   : > { %v1428_v4 = vpop.f32.mrb[6].mxu0 }
 0x836   : > { %v1429_v6 = vadd.f32 %v1428_v4, %v1361_v1  ;;  %v1870_v8 = vpop.f32.mrb[7].mxu0 }
 0x838   : > { %v1432_v10 = vadd.f32 %v1429_v6, %v1279_v56 }
 0x83a   : > { %v1433_v11 = vsel %vm425_vm2, %v1432_v10, 0.0  ;;  %v1437_v12 = vmul.f32 %v1432_v10, %v1432_v10 }
 0x83b   : > { %1434 = vadd.xlane.f32.xlu0 %v1433_v11 }
 0x83c   : > { %v1438_v13 = vsel %vm425_vm2, %v1437_v12, 0.0 }
 0x83f   : > { %1439 = vadd.xlane.f32.xlu0 %v1438_v13 }
 0x8c8   : > { %v1435_v14 = vpop.xlane.xlu0 %1434 }
 0x8c9   : > { %v1436_v15 = vmul.f32 0.03125, %v1435_v14 }
 0x8cb   : > { %v1443_v17 = vmul.f32 %v1436_v15, %v1436_v15  ;;  %v1442_v23 = vsub.f32 %v1432_v10, %v1436_v15 }
 0x8cc   : > { %v1440_v16 = vpop.xlane.xlu0 %1439 }
 0x8cd   : > { %v1441_v18 = vmul.f32 0.03125, %v1440_v16 }
 0x8cf   : > { %v1444_v19 = vsub.f32 %v1441_v18, %v1443_v17 }
 0x8d1   : > { %v1445_v20 = vadd.f32 1e-05, %v1444_v19 }
 0x8d3   : > { %2019 = vrsqrt.f32 %v1445_v20 }
 0x8dd   : > { %v2020_v25 = vpop.eup %2019 }
 0x8de   : > { %v1447_v27 = vmul.f32 %v2020_v25, %v1442_v23  ;;  %1462 = sbr.rel (%p1640_p1) target bundleno = 2277 (0x8e5), region = 52 }
 0x8e0   : > { %v1452_v28 = vmul.f32 %v1451_v24, %v1447_v27 }
 0x8e2   : > { %v1457_v29 = vadd.f32 %v1456_v26, %v1452_v28 }
 0x8e4   : > { %1458 = vst.msk [vmem:[#allocation2] sm:$0xff] %vm425_vm2, %v1457_v29  ;;  %1463 = vst.msk [vmem:[%s327_s0] sm:$0xff] (!%p1640_p1), %vm425_vm2, %v1457_v29 }
 0x8e5 PF: > { %s1642_s23 = sshll.u32 %s2103_s25, 7  ;;  %s1478_s21 = sshll.u32 %s327_s0, 4  ;;  %s1479_s21 = int_to_ptr.vmem [resolvable:$true] %s1478_s21 }
 0x8e6   : > { %s2407_s12 = scalar_lea.hbm %s2464_s6, %s1642_s23  ;;  %s2484_s24 = sand.u32 1, %s2091_s22  }
 0x8e7   : > { %s1465_s27 = scalar_lea.sflag [#allocation4], %s2484_s24  ;;  %s2021_s7 = scalar_lea.vmem %s1479_s21, 128 }
 0x8e8   : > { %p2022_p2 = scmp.ne.s32.totalorder %s1479_s21, %s2021_s7  ;;  %s2134_s8 = smov [#allocation3]  }
 0x8e9   : > { %s2025_s10 = sshll.u32 %s2134_s8, 4  ;;  %s2026_s10 = int_to_ptr.vmem [resolvable:$false] %s2025_s10 }
 0x8ea   : > { %p2023_p4 = pnand %p2022_p2, %p2219_p3  ;;  %s2027_s13 = scalar_lea.vmem %s2026_s10, 256 }
 0x8eb   : > { %p2028_p6 = scmp.lt.s32.totalorder %s1479_s21, %s2026_s10  ;;  %p2029_p7 = scmp.lt.s32.totalorder %s2027_s13, %s2021_s7 }
 0x8ec   : > { %p2024_p5 = pneg %p2023_p4 }
 0x8ed   : > { %p2030_p8 = por %p2029_p7, %p2028_p6 }
 0x8ef   : > { %p2031_p10 = pnand %p2030_p8, %p2024_p5 }
 0x8f1   : > { %2034 = shalt.err (!%p2031_p10)
}
 0x8f2   : > { %s2035_s0 = scalar_lea.hbm %s2407_s12, 128  ;;  %s2039_s14 = scalar_lea.hbm %s2464_s6, 256 }
 0x8f3   : > { %p2036_p11 = scmp.ne.s32.totalorder %s2407_s12, %s2035_s0  ;;  %p2040_p0 = scmp.lt.u32.totalorder %s2407_s12, %s2464_s6 }
 0x8f4   : > { %p2041_p1 = scmp.lt.u32.totalorder %s2039_s14, %s2035_s0  ;;  %p2043_p4 = scmp.lt.u32.totalorder %s2035_s0, %s2407_s12 }
 0x8f5   : > { %p2037_p12 = pnand %p2036_p11, %p2219_p3 }
 0x8f6   : > { %p2042_p2 = por %p2041_p1, %p2040_p0 }
 0x8f7   : > { %p2038_p13 = pneg %p2037_p12 }
 0x8f8   : > { %p2044_p5 = por %p2043_p4, %p2042_p2 }
 0x8fa   : > { %p2045_p6 = pnand %p2044_p5, %p2038_p13 }
 0x8fc   : > { %2048 = shalt.err (!%p2045_p6)
}
 0x8fd   : > { %1913 = dma.vmem_to_hbm [thread:$0]  (%p2219_p3), %s1479_s21, 128, %s2407_s12, %s1465_s27  }
 0x8fe PF: > { %s2485_s30 = sld [smem:[#allocation6_spill]]  ;;  %p1919_p7 = scmp.ge.s32.totalorder %s2115_s28, 2 }
 0x900   : > { %p1916_p8 = pnand %p1919_p7, %p2229_p9 }
 0x904   : > { %s1490_s19 = sand.u32 1, %s2485_s30  }
 0x905   : > { %s1491_s20 = scalar_lea.sflag [#allocation4], %s1490_s19 }
 0x906   : > { %2082 = dma.done.wait (!%p1916_p8), %s1491_s20, 128  }
 0x907   : > { %2084 = vsyncadd (!%p1916_p8), %s1491_s20, 4294967168  ;;  %s19_s28 = sadd.s32 1, %s2115_s28   ;;  %s2487_s11 = sld [smem:[#allocation7_spill]] }
 0x908   : > { %p16_p10 = scmp.ge.s32.totalorder %s19_s28, 6   ;;  %s2488_s23 = sld [smem:[#allocation13_spill]] }
 0x909   : > { %s2489_s24 = sld [smem:[#allocation8_spill]]  ;;  %s2490_s25 = sld [smem:[#allocation9_spill]] }
 0x90a   : > { %s2491_s26 = sld [smem:[#allocation10_spill]]  ;;  %s2492_s27 = sld [smem:[#allocation11_spill]] }
 0x90b   : > { %s2493_s21 = smov %s2091_s22  ;;  %18 = sbr.rel (!%p16_p10) target bundleno = 7 (0x7), region = 102 }
 0x90d   : > { %s2494_s22 = smov %s2487_s11 }
 0x912   :  { %1496 = vsyncpa [#allocation4], 1 }
 0x913   :  { %1498 = vsyncpa [#allocation4 + $0x1], 1 }

</bundles_post_ra>
